<compile_context>
chip_gen: v7x
topology: tpu7x:2x2x1
jax: 0.10.0
libtpu: 0.0.40
codegen_flags: <defaults>
</compile_context>

<pallas_src>
import math

import jax
import jax.numpy as jnp
import numpy as np
from jax.experimental import pallas as pl
from jax.experimental.pallas import tpu as pltpu


def _drop_path_kernel(scale_ref, x_ref, o_ref):
    # (tm, tn) * (tm, 1) broadcast multiply — the whole hot loop.
    o_ref[...] = x_ref[...] * scale_ref[...]


def drop_path(x, drop_prob, seed, training=True, donate_x=False,
              target_block_bytes=2 * 1024 * 1024, tn_cap=2048):
    """Pallas DropPath forward. x: (B, ...) with batch as the leading dim."""
    if not training or drop_prob is None or drop_prob == 0.0:
        return x

    keep_prob = 1.0 - float(drop_prob)
    B = x.shape[0]
    N = int(np.prod(x.shape[1:]))

    # Per-sample keep decision, matching torch: floor(keep_prob + U[0,1)).
    key = jax.random.PRNGKey(seed)
    u = jax.random.uniform(key, (B,), dtype=jnp.float32)
    keep = jnp.floor(keep_prob + u)
    scale = (keep * (1.0 / keep_prob)).astype(x.dtype)   # 0 or 1/keep_prob

    # Dtype-aware sublane fold: pack rows to a multiple of the per-vreg
    # sublane count (8 f32, 16 bf16, 32 int8) so stores are unmasked.
    itemsize = jnp.dtype(x.dtype).itemsize
    sub = max(8, 32 // itemsize)
    r = sub // math.gcd(B, sub)
    if r > 1 and N % (r * 128) == 0:
        R, Ncols = B * r, N // r
        scale_rows = jnp.repeat(scale, r).reshape(R, 1)
    else:
        R, Ncols = B, N
        scale_rows = scale.reshape(R, 1)

    x2 = x.reshape(R, Ncols)

    # Lane tile: full width if small, else a 128-multiple cap; ragged last
    # block handled by the cdiv grid.
    tn = Ncols if Ncols <= tn_cap else tn_cap

    # Row tile: multiple of the sublane count, sized so one x block is
    # ~target_block_bytes (soft target; keeps in+out double buffers well under
    # every generation's scoped-VMEM default).
    tm_target = max(sub, (target_block_bytes // (tn * itemsize)) // sub * sub)
    tm = R if R <= tm_target else tm_target

    grid = (pl.cdiv(R, tm), pl.cdiv(Ncols, tn))

    out = pl.pallas_call(
        _drop_path_kernel,
        grid=grid,
        in_specs=[
            pl.BlockSpec((tm, 1), lambda i, j: (i, 0)),
            pl.BlockSpec((tm, tn), lambda i, j: (i, j)),
        ],
        out_specs=pl.BlockSpec((tm, tn), lambda i, j: (i, j)),
        out_shape=jax.ShapeDtypeStruct((R, Ncols), x.dtype),
        compiler_params=pltpu.CompilerParams(
            dimension_semantics=("parallel", "parallel"),
        ),
        cost_estimate=pl.CostEstimate(
            flops=R * Ncols,
            transcendentals=0,
            bytes_accessed=2 * R * Ncols * itemsize + R * itemsize,
        ),
        input_output_aliases=({1: 0} if donate_x else {}),
    )(scale_rows, x2)

    return out.reshape(x.shape)


def _check_samples(y_np, x_np, keep_prob, rtol, atol):
    for b in range(x_np.shape[0]):
        kept = np.allclose(y_np[b], x_np[b] / keep_prob, rtol=rtol, atol=atol)
        dropped = np.allclose(y_np[b], 0.0)
        assert kept or dropped, f"sample {b}: invalid DropPath output"


if __name__ == "__main__":
    key = jax.random.PRNGKey(0)
    drop_prob = 0.3
    kp = 1.0 - drop_prob

    # f32 case (B=2 -> sublane fold r=4, single (8,256) block).
    B, C, H, W = 2, 4, 16, 16
    x = jax.random.normal(key, (B, C, H, W), dtype=jnp.float32)
    y = drop_path(x, drop_prob=drop_prob, seed=1234, training=True)
    y = jax.block_until_ready(y)
    _check_samples(np.asarray(y), np.asarray(x), kp, rtol=1e-5, atol=1e-5)

    # bf16 case with awkward batch (B=3 -> no fold, full-row block).
    key2 = jax.random.PRNGKey(1)
    xb = jax.random.normal(key2, (3, 8, 8, 16), dtype=jnp.bfloat16)
    yb = drop_path(xb, drop_prob=drop_prob, seed=7, training=True)
    yb = jax.block_until_ready(yb)
    _check_samples(np.asarray(yb, dtype=np.float32),
                   np.asarray(xb, dtype=np.float32), kp, rtol=2e-2, atol=5e-2)

    # eval mode / drop_prob == 0 -> identity
    x_np = np.asarray(x)
    y_eval = drop_path(x, drop_prob=drop_prob, seed=1234, training=False)
    assert np.allclose(np.asarray(y_eval), x_np)
    y_zero = drop_path(x, drop_prob=0.0, seed=1234, training=True)
    assert np.allclose(np.asarray(y_zero), x_np)

    print("KERNEL_OK")
</pallas_src>

<mosaic_0001>
module attributes {stable_mosaic.version = 11 : i64} {
  func.func @_drop_path_kernel(%arg0: i32, %arg1: i32, %arg2: memref<8x1xf32, #tpu.memory_space<vmem>>, %arg3: memref<8x256xf32, #tpu.memory_space<vmem>>, %arg4: memref<8x256xf32, #tpu.memory_space<vmem>>) attributes {dimension_semantics = [#tpu.dimension_semantics<parallel>, #tpu.dimension_semantics<parallel>], iteration_bounds = array<i64: 1, 1>, scalar_prefetch = 0 : i64, scratch_operands = 0 : i64, tpu.core_type = #tpu.core_type<tc>, window_params = [{transform_indices = @transform_0, window_bounds = array<i64: 8, 1>}, {transform_indices = @transform_1, window_bounds = array<i64: 8, 256>}, {transform_indices = @transform_2, window_bounds = array<i64: 8, 256>}]} {
    %c0 = arith.constant 0 : index
    %c0_0 = arith.constant 0 : index
    %0 = vector.load %arg3[%c0, %c0_0] : memref<8x256xf32, #tpu.memory_space<vmem>>, vector<8x256xf32>
    %c0_1 = arith.constant 0 : index
    %c0_2 = arith.constant 0 : index
    %1 = vector.load %arg2[%c0_1, %c0_2] : memref<8x1xf32, #tpu.memory_space<vmem>>, vector<8x1xf32>
    %2 = vector.broadcast %1 : vector<8x1xf32> to vector<8x256xf32>
    %3 = arith.mulf %0, %2 : vector<8x256xf32>
    %c0_3 = arith.constant 0 : index
    %c0_4 = arith.constant 0 : index
    %4 = vector.load %arg4[%c0_3, %c0_4] : memref<8x256xf32, #tpu.memory_space<vmem>>, vector<8x256xf32>
    tpu.vector_store %arg4[%c0_3, %c0_4], %3 {strides = array<i32>} : memref<8x256xf32, #tpu.memory_space<vmem>>, vector<8x256xf32>,
    return
  }
  func.func @transform_0(%arg0: i32, %arg1: i32) -> (i32, i32) {
    %c0_i32 = arith.constant 0 : i32
    %c0_i32_0 = arith.constant 0 : i32
    return %arg0, %c0_i32 : i32, i32
  }
  func.func @transform_1(%arg0: i32, %arg1: i32) -> (i32, i32) {
    %c0_i32 = arith.constant 0 : i32
    return %arg0, %arg1 : i32, i32
  }
  func.func @transform_2(%arg0: i32, %arg1: i32) -> (i32, i32) {
    %c0_i32 = arith.constant 0 : i32
    return %arg0, %arg1 : i32, i32
  }
}

</mosaic_0001>

<bundles_post_ra>
// kernel: tpu_custom_call.1
= control target key start
LH: loop header
LB: loop body
LE: loop exit
PB: predicated region body
PF: predicated region fallthrough
CT: control target
= control target key end

     0   :  { %7 = vsyncpa [#allocation3], 0  ;;  %s148_s0 = inlined_call_operand.vmem [shape: f32[8,1], index: 0, kind: input, shape index: {}]   ;;  %s149_s1 = inlined_call_operand.hbm [shape: f32[8,256], index: 1, kind: input, shape index: {}]   ;;  %s150_s2 = inlined_call_operand.hbm [shape: f32[8,256], index: 2, kind: output, shape index: {}]  }
   0x1   :  { %8 = vsyncpa [#allocation4], 0  ;;  %s103_s9 = smov [#allocation2]   ;;  %s55_s13 = scalar_lea.hbm %s149_s1, 256 }
   0x2   :  { %s17_s10 = sshll.u32 %s103_s9, 4  ;;  %p56_p0 = scmp.ne.s32.totalorder %s149_s1, %s55_s13  ;;  %s18_s10 = int_to_ptr.vmem [resolvable:$true] %s17_s10 }
   0x3   :  { %p59_p1 = scmp.lt.u32.totalorder %s55_s13, %s149_s1 }
   0x5   :  { %p61_p2 = pnand %p59_p1, %p56_p0 }
   0x7   :  { %64 = shalt.err (!%p61_p2)
}
   0x8   :  { %s65_s18 = scalar_lea.vmem %s18_s10, 256  ;;  %p70_p4 = scmp.lt.s32.totalorder %s18_s10, %s18_s10 }
   0x9   :  { %p66_p3 = scmp.ne.s32.totalorder %s18_s10, %s65_s18  ;;  %p71_p5 = scmp.lt.s32.totalorder %s65_s18, %s65_s18 }
   0xb   :  { %p72_p6 = por %p71_p5, %p70_p4 }
   0xd   :  { %p73_p7 = pnand %p72_p6, %p66_p3 }
   0xf   :  { %76 = shalt.err (!%p73_p7)
}
  0x10   :  { %20 = dma.hbm_to_vmem [thread:$0]  %s149_s1, 256, %s18_s10, [#allocation3]  }
  0x11   :  { %99 = dma.done.wait [#allocation3], 256  }
  0x12   :  { %100 = vsyncadd [#allocation3], 4294967040  ;;  %v104_v0 = vmov 0   ;;  %v26_v1 = vld [vmem:[%s148_s0] sm:$0xff]  ;;  %v25_v3 = vld [vmem:[#allocation2 + $0x8] sm:$0xff]  ;;  %s105_s23 = smov [#allocation5]  }
  0x13   :  { %54 = vset.pattern.permute.xlu0 %v104_v0  ;;  %v24_v2 = vld [vmem:[#allocation2] sm:$0xff]  ;;  %s42_s24 = sshll.u32 %s105_s23, 4  ;;  %s43_s24 = int_to_ptr.vmem [resolvable:$true] %s42_s24 }
  0x14   :  { %29 = vperm.xlu0 %54, %v26_v1   ;;  %s77_s1 = scalar_lea.vmem %s43_s24, 256  ;;  %p82_p9 = scmp.lt.s32.totalorder %s43_s24, %s43_s24 }
  0x15   :  { %p78_p8 = scmp.ne.s32.totalorder %s43_s24, %s77_s1  ;;  %p83_p10 = scmp.lt.s32.totalorder %s77_s1, %s77_s1 }
  0x17   :  { %p84_p11 = por %p83_p10, %p82_p9 }
  0x19   :  { %p85_p12 = pnand %p84_p11, %p78_p8 }
  0x93   :  { %v30_v4 = vpop.permute.xlu0 %29 }
  0x94   :  { %v32_v5 = vmul.f32 %v30_v4, %v24_v2  ;;  %v33_v6 = vmul.f32 %v30_v4, %v25_v3 }
  0x96   :  { %34 = vst [vmem:[#allocation5] sm:$0xff] %v32_v5  ;;  %35 = vst [vmem:[#allocation5 + $0x8] sm:$0xff] %v33_v6 }
  0x97   :  { %88 = shalt.err (!%p85_p12)
}
  0x98   :  { %s89_s26 = scalar_lea.hbm %s150_s2, 256 }
  0x99   :  { %p90_p13 = scmp.ne.s32.totalorder %s150_s2, %s89_s26  ;;  %p93_p0 = scmp.lt.u32.totalorder %s89_s26, %s150_s2 }
  0x9b   :  { %p95_p1 = pnand %p93_p0, %p90_p13 }
  0x9d   :  { %98 = shalt.err (!%p95_p1)
}
  0x9e   :  { %45 = dma.vmem_to_hbm [thread:$0]  %s43_s24, 256, %s150_s2, [#allocation4]  }
  0x9f   :  { %101 = dma.done.wait [#allocation4], 256  }
  0xa0   :  { %102 = vsyncadd [#allocation4], 4294967040 }
  0xa1   :  { %49 = vsyncpa [#allocation3], 1 }
  0xa2   :  { %50 = vsyncpa [#allocation4], 1 }

</bundles_post_ra>
